<compile_context>
chip_gen: v7x
topology: tpu7x:2x2x1
jax: 0.10.0
libtpu: 0.0.40
codegen_flags: <defaults>
</compile_context>

<pallas_src>
import functools

import jax
import jax.numpy as jnp
from jax.experimental import pallas as pl
from jax.experimental.pallas import tpu as pltpu


def _round_up(x, m):
    return ((x + m - 1) // m) * m


def _full_graph_edge_kernel(c_lo_ref, nchunks_ref, edge_ref, attr_ref, out_ref,
                            *, tile_nn):
    """grid = (row_tile t, edge_chunk k); accumulates into out_ref across k."""
    t = pl.program_id(0)
    k = pl.program_id(1)
    n_k = nchunks_ref[t]           # number of edge chunks holding this tile's edges

    # Empty row tile: single zero store, no compare / matmul, no extra passes.
    @pl.when(jnp.logical_and(k == 0, n_k == 0))
    def _empty():
        out_ref[...] = jnp.zeros_like(out_ref)

    # Only chunks [c_lo[t], c_lo[t] + n_k) contain edges for this row tile.
    @pl.when(k < n_k)
    def _compute():
        e_chunk = edge_ref.shape[1]
        # Subtract tile_start on the [1, e_chunk] edge-id row (cheap) instead of
        # adding it to the big iota. Sentinel (-1) lanes and edges belonging to
        # neighbouring row tiles fall outside [0, tile_nn) and never match.
        local = edge_ref[...] - t * tile_nn
        rows = jax.lax.broadcasted_iota(jnp.int32, (tile_nn, e_chunk), 0)
        onehot = (rows == local).astype(jnp.bfloat16)
        # Scatter-add as a bf16 one-hot MXU matmul with f32 accumulation.
        contrib = jnp.dot(onehot, attr_ref[...],
                          preferred_element_type=jnp.float32)

        @pl.when(k == 0)
        def _first():
            out_ref[...] = contrib        # overwrite: fuses init into first chunk

        @pl.when(k > 0)
        def _rest():
            out_ref[...] += contrib


def add_full_graph_edge_encoder(edge_index, edge_attr, bias, num_nodes, *,
                                tile_nn=1024, e_chunk=512):
    """edge_index: [2, E] int, edge_attr: [E, D] float (or None), bias: [D]."""
    if edge_attr is None:
        edge_attr = jnp.zeros((edge_index.shape[1], bias.shape[0]), jnp.float32)

    E = edge_index.shape[1]
    D = edge_attr.shape[1]
    N = num_nodes
    NN = N * N

    # TODO(synk): int32 flat ids overflow for num_nodes > ~46340 (NN > 2^31).
    edge_flat = (edge_index[0].astype(jnp.int32) * N
                 + edge_index[1].astype(jnp.int32))

    # add_self_loops(fill_value=bias): append N pseudo-edges (i, i) whose attr
    # row is `bias`; coalesce's sum then lands them on the diagonal. This also
    # guarantees E_tot >= N > 0 for the edge_attr=None / E == 0 path.
    diag_flat = jnp.arange(N, dtype=jnp.int32) * (N + 1)
    flat_all = jnp.concatenate([edge_flat, diag_flat])
    E_tot = E + N

    tile_nn = min(_round_up(tile_nn, 8), _round_up(NN, 8))
    NN_pad = _round_up(NN, tile_nn)
    num_tiles = NN_pad // tile_nn
    e_chunk = _round_up(max(e_chunk, 128), 128)      # lane / MXU contraction dim
    E_pad = _round_up(E_tot, e_chunk)
    num_chunks = E_pad // e_chunk
    D_pad = _round_up(D + 1, 128)                    # +1 multiplicity/mask column

    # Augmented attr: real edge rows + bias pseudo rows + a ones column carrying
    # edge multiplicity (the existence mask after coalesce).
    attr_aug = jnp.zeros((E_tot, D_pad), jnp.float32)
    attr_aug = attr_aug.at[:E, :D].set(edge_attr.astype(jnp.float32))
    attr_aug = attr_aug.at[E:, :D].set(
        jnp.broadcast_to(bias.astype(jnp.float32), (N, D)))
    attr_aug = attr_aug.at[:, D].set(1.0)

    # Sort edges by flat id so each row tile's edges occupy a contiguous chunk
    # range -> each tile only scans its own chunks (O(E) total work).
    order = jnp.argsort(flat_all)
    flat_sorted = flat_all[order]
    attr_sorted = attr_aug[order]

    flat_p = jnp.full((1, E_pad), -1, jnp.int32).at[0, :E_tot].set(flat_sorted)
    attr_p = (jnp.zeros((E_pad, D_pad), jnp.float32)
              .at[:E_tot].set(attr_sorted)).astype(jnp.bfloat16)

    # Per-row-tile chunk window (scalar-prefetched into SMEM, drives index_maps).
    tile_of = flat_sorted // tile_nn
    counts = jnp.zeros((num_tiles,), jnp.int32).at[tile_of].add(1)
    starts = jnp.cumsum(counts) - counts
    c_lo = (starts // e_chunk).astype(jnp.int32)
    c_hi = (starts + counts - 1) // e_chunk
    nchunks = jnp.where(counts > 0, c_hi - c_lo + 1, 0).astype(jnp.int32)

    def edge_map(t, k, c_lo_ref, nchunks_ref):
        return (0, jnp.minimum(c_lo_ref[t] + k, num_chunks - 1))

    def attr_map(t, k, c_lo_ref, nchunks_ref):
        return (jnp.minimum(c_lo_ref[t] + k, num_chunks - 1), 0)

    kernel = functools.partial(_full_graph_edge_kernel, tile_nn=tile_nn)
    out = pl.pallas_call(
        kernel,
        out_shape=jax.ShapeDtypeStruct((NN_pad, D_pad), jnp.float32),
        grid_spec=pltpu.PrefetchScalarGridSpec(
            num_scalar_prefetch=2,
            grid=(num_tiles, num_chunks),
            in_specs=[pl.BlockSpec((1, e_chunk), edge_map),
                      pl.BlockSpec((e_chunk, D_pad), attr_map)],
            out_specs=pl.BlockSpec((tile_nn, D_pad), lambda t, k, *_: (t, 0)),
        ),
        compiler_params=pltpu.CompilerParams(
            dimension_semantics=("parallel", "arbitrary"),  # t across cores, k reduces
            vmem_limit_bytes=32 * 1024 * 1024),             # small footprint; fits v7x
    )(c_lo, nchunks, flat_p, attr_p)

    # Glue: slice padding, recover the coalesced full_edge_index (lexicographic
    # order == ascending flat index). Padded with -1 (true count is data dependent).
    dense = out[:NN, :D]
    mask = out[:NN, D] > 0.5
    flat = jnp.nonzero(mask, size=NN, fill_value=-1)[0]
    full_edge_index = jnp.where(flat[None, :] >= 0,
                                jnp.stack([flat // N, flat % N]),
                                -1)
    return full_edge_index, dense, mask


if __name__ == "__main__":
    key = jax.random.PRNGKey(0)
    N, D, E = 16, 32, 200  # num_nodes, out_dim, num_edges (with duplicates)

    k1, k2, k3, k4 = jax.random.split(key, 4)
    src = jax.random.randint(k1, (E,), 0, N, dtype=jnp.int32)
    dst = jax.random.randint(k2, (E,), 0, N, dtype=jnp.int32)
    edge_index = jnp.stack([src, dst])
    edge_attr = jax.random.normal(k3, (E, D), jnp.float32)
    # TODO(synk): torch.nn.init.xavier_normal_ on a 1-D tensor is ill-defined; we use
    # std = sqrt(2 / (1 + out_dim)) as the xavier-normal std for an implicit (1, D) shape.
    std = (2.0 / (1 + D)) ** 0.5
    bias = std * jax.random.normal(k4, (D,), jnp.float32)

    # tile_nn=128 / e_chunk=128 -> 2 row tiles, 2 edge chunks: exercises the
    # data-dependent chunk window (per-tile c_lo/nchunks) and chunk gating.
    full_edge_index, dense, mask = add_full_graph_edge_encoder(
        edge_index, edge_attr, bias, N, tile_nn=128, e_chunk=128)
    jax.block_until_ready((full_edge_index, dense, mask))

    # Pure-JAX reference (edge_attr and bias rounded to bf16 to match the MXU path).
    flat_ref = src * N + dst
    attr_bf = edge_attr.astype(jnp.bfloat16).astype(jnp.float32)
    bias_bf = bias.astype(jnp.bfloat16).astype(jnp.float32)
    ref_dense = jnp.zeros((N * N, D), jnp.float32).at[flat_ref].add(attr_bf)
    diag = jnp.arange(N) * (N + 1)
    ref_dense = ref_dense.at[diag].add(bias_bf)
    ref_mask = jnp.zeros((N * N,), bool).at[flat_ref].set(True).at[diag].set(True)
    ref_flat = jnp.nonzero(ref_mask, size=N * N, fill_value=-1)[0]
    ref_edge_index = jnp.where(ref_flat[None, :] >= 0,
                               jnp.stack([ref_flat // N, ref_flat % N]), -1)

    assert jnp.allclose(dense, ref_dense, atol=1e-3), "dense edge_attr mismatch"
    assert jnp.array_equal(mask, ref_mask), "edge mask mismatch"
    assert jnp.array_equal(full_edge_index, ref_edge_index), "full_edge_index mismatch"
    print("KERNEL_OK")
</pallas_src>

<mosaic_0001>
module attributes {stable_mosaic.version = 11 : i64} {
  func.func @_full_graph_edge_kernel(%arg0: i32, %arg1: i32, %arg2: memref<2xi32, #tpu.memory_space<smem>>, %arg3: memref<2xi32, #tpu.memory_space<smem>>, %arg4: memref<1x128xi32, #tpu.memory_space<vmem>>, %arg5: memref<128x128xbf16, #tpu.memory_space<vmem>>, %arg6: memref<128x128xf32, #tpu.memory_space<vmem>>) attributes {dimension_semantics = [#tpu.dimension_semantics<parallel>, #tpu.dimension_semantics<arbitrary>], iteration_bounds = array<i64: 2, 2>, scalar_prefetch = 2 : i64, scratch_operands = 0 : i64, tpu.core_type = #tpu.core_type<tc>, window_params = [{transform_indices = @transform_0, window_bounds = array<i64: 1, 128>}, {transform_indices = @transform_1, window_bounds = array<i64: 128, 128>}, {transform_indices = @transform_2, window_bounds = array<i64: 128, 128>}]} {
    %0 = arith.index_cast %arg0 : i32 to index
    %1 = memref.load %arg3[%0] : memref<2xi32, #tpu.memory_space<smem>>
    %c0_i32 = arith.constant 0 : i32
    %2 = arith.cmpi eq, %arg1, %c0_i32 : i32
    %c0_i32_0 = arith.constant 0 : i32
    %3 = arith.cmpi eq, %1, %c0_i32_0 : i32
    %4 = arith.andi %2, %3 : i1
    %5 = arith.extui %4 : i1 to i32
    %c0_i32_1 = arith.constant 0 : i32
    %6 = arith.cmpi ne, %5, %c0_i32_1 : i32
    scf.if %6 {
      %cst = arith.constant 0.000000e+00 : f32
      %10 = vector.broadcast %cst : f32 to vector<128x128xf32>
      %c0 = arith.constant 0 : index
      %c0_3 = arith.constant 0 : index
      %11 = vector.load %arg6[%c0, %c0_3] : memref<128x128xf32, #tpu.memory_space<vmem>>, vector<128x128xf32>
      tpu.vector_store %arg6[%c0, %c0_3], %10 {strides = array<i32>} : memref<128x128xf32, #tpu.memory_space<vmem>>, vector<128x128xf32>,
    } else {
    }
    %7 = arith.cmpi slt, %arg1, %1 : i32
    %8 = arith.extui %7 : i1 to i32
    %c0_i32_2 = arith.constant 0 : i32
    %9 = arith.cmpi ne, %8, %c0_i32_2 : i32
    scf.if %9 {
      %c0 = arith.constant 0 : index
      %c0_3 = arith.constant 0 : index
      %10 = vector.load %arg4[%c0, %c0_3] : memref<1x128xi32, #tpu.memory_space<vmem>>, vector<1x128xi32>
      %c128_i32 = arith.constant 128 : i32
      %11 = arith.muli %arg0, %c128_i32 : i32
      %12 = vector.broadcast %11 : i32 to vector<1x128xi32>
      %13 = arith.subi %10, %12 : vector<1x128xi32>
      %14 = tpu.iota {dimensions = array<i32: 0>} : vector<128x128xi32>
      %15 = vector.broadcast %13 : vector<1x128xi32> to vector<128x128xi32>
      %16 = arith.cmpi eq, %14, %15 : vector<128x128xi32>
      %17 = arith.extui %16 : vector<128x128xi1> to vector<128x128xi32>
      %18 = arith.sitofp %17 : vector<128x128xi32> to vector<128x128xf32>
      %19 = arith.truncf %18 : vector<128x128xf32> to vector<128x128xbf16>
      %c0_4 = arith.constant 0 : index
      %c0_5 = arith.constant 0 : index
      %20 = vector.load %arg5[%c0_4, %c0_5] : memref<128x128xbf16, #tpu.memory_space<vmem>>, vector<128x128xbf16>
      %cst = arith.constant dense<0.000000e+00> : vector<128x128xf32>
      %21 = tpu.matmul %19, %20, %cst {dimension_numbers = #tpu.dot_dimension_numbers<[1], [0], [0], [1], [0, 0, 1, 1], [], []>} : vector<128x128xbf16>, vector<128x128xbf16>, vector<128x128xf32> -> vector<128x128xf32>
      %c0_i32_6 = arith.constant 0 : i32
      %22 = arith.cmpi eq, %arg1, %c0_i32_6 : i32
      %23 = arith.extui %22 : i1 to i32
      %c0_i32_7 = arith.constant 0 : i32
      %24 = arith.cmpi ne, %23, %c0_i32_7 : i32
      scf.if %24 {
        %c0_10 = arith.constant 0 : index
        %c0_11 = arith.constant 0 : index
        %28 = vector.load %arg6[%c0_10, %c0_11] : memref<128x128xf32, #tpu.memory_space<vmem>>, vector<128x128xf32>
        tpu.vector_store %arg6[%c0_10, %c0_11], %21 {strides = array<i32>} : memref<128x128xf32, #tpu.memory_space<vmem>>, vector<128x128xf32>,
      } else {
      }
      %c0_i32_8 = arith.constant 0 : i32
      %25 = arith.cmpi sgt, %arg1, %c0_i32_8 : i32
      %26 = arith.extui %25 : i1 to i32
      %c0_i32_9 = arith.constant 0 : i32
      %27 = arith.cmpi ne, %26, %c0_i32_9 : i32
      scf.if %27 {
        %c0_10 = arith.constant 0 : index
        %c0_11 = arith.constant 0 : index
        %28 = vector.load %arg6[%c0_10, %c0_11] : memref<128x128xf32, #tpu.memory_space<vmem>>, vector<128x128xf32>
        %29 = arith.addf %28, %21 : vector<128x128xf32>
        %c0_12 = arith.constant 0 : index
        %c0_13 = arith.constant 0 : index
        %30 = vector.load %arg6[%c0_12, %c0_13] : memref<128x128xf32, #tpu.memory_space<vmem>>, vector<128x128xf32>
        tpu.vector_store %arg6[%c0_12, %c0_13], %29 {strides = array<i32>} : memref<128x128xf32, #tpu.memory_space<vmem>>, vector<128x128xf32>,
      } else {
      }
    } else {
    }
    return
  }
  func.func @transform_0(%arg0: i32, %arg1: i32, %arg2: memref<2xi32, #tpu.memory_space<smem>>, %arg3: memref<2xi32, #tpu.memory_space<smem>>) -> (i32, i32) {
    %0 = arith.index_cast %arg0 : i32 to index
    %1 = memref.load %arg2[%0] : memref<2xi32, #tpu.memory_space<smem>>
    %2 = arith.addi %1, %arg1 : i32
    %c1_i32 = arith.constant 1 : i32
    %3 = arith.minsi %2, %c1_i32 : i32
    %c0_i32 = arith.constant 0 : i32
    %c0_i32_0 = arith.constant 0 : i32
    return %c0_i32, %3 : i32, i32
  }
  func.func @transform_1(%arg0: i32, %arg1: i32, %arg2: memref<2xi32, #tpu.memory_space<smem>>, %arg3: memref<2xi32, #tpu.memory_space<smem>>) -> (i32, i32) {
    %0 = arith.index_cast %arg0 : i32 to index
    %1 = memref.load %arg2[%0] : memref<2xi32, #tpu.memory_space<smem>>
    %2 = arith.addi %1, %arg1 : i32
    %c1_i32 = arith.constant 1 : i32
    %3 = arith.minsi %2, %c1_i32 : i32
    %c0_i32 = arith.constant 0 : i32
    %c0_i32_0 = arith.constant 0 : i32
    return %3, %c0_i32 : i32, i32
  }
  func.func @transform_2(%arg0: i32, %arg1: i32, %arg2: memref<2xi32, #tpu.memory_space<smem>>, %arg3: memref<2xi32, #tpu.memory_space<smem>>) -> (i32, i32) {
    %c0_i32 = arith.constant 0 : i32
    %c0_i32_0 = arith.constant 0 : i32
    return %arg0, %c0_i32 : i32, i32
  }
}

</mosaic_0001>

<bundles_post_ra>
// kernel: tpu_custom_call.1
= control target key start
LH: loop header
LB: loop body
LE: loop exit
PB: predicated region body
PF: predicated region fallthrough
CT: control target
= control target key end

     0   :  { %s1555_s0 = inlined_call_operand.hbm [shape: s32[2], index: 0, kind: input, shape index: {}]   ;;  %s1556_s2 = inlined_call_operand.vmem [shape: s32[1,256], index: 2, kind: input, shape index: {}]   ;;  %s1557_s3 = inlined_call_operand.hbm [shape: bf16[256,128], index: 3, kind: input, shape index: {}]   ;;  %s1558_s4 = inlined_call_operand.hbm [shape: f32[256,128], index: 4, kind: output, shape index: {}]   ;;  %s1559_s1 = inlined_call_operand.vmem [shape: s32[2], index: 1, kind: input, shape index: {}]  }
   0x1   :  { %s942_s17 = scalar_lea.hbm %s1555_s0, 16 }
   0x2   :  { %p943_p0 = scmp.ne.s32.totalorder %s1555_s0, %s942_s17  ;;  %p946_p1 = scmp.lt.u32.totalorder %s942_s17, %s1555_s0 }
   0x4   :  { %p948_p2 = pnand %p946_p1, %p943_p0 }
   0x6   :  { %951 = shalt.err (!%p948_p2)  }
   0x7   :  { %s1120_s22 = smov [#allocation3]   ;;  %s11_s27 = sshll.u32 %s1559_s1, 4  ;;  %s12_s27 = int_to_ptr.vmem [resolvable:$true] %s11_s27 }
   0x8   :  { %10 = dma.hbm_to_smem %s1555_s0, 16, %s1120_s22, [#allocation2] }
   0x9   :  { %s952_s28 = scalar_lea.vmem %s12_s27, 16  ;;  %p957_p4 = scmp.lt.s32.totalorder %s12_s27, %s12_s27 }
   0xa   :  { %p953_p3 = scmp.ne.s32.totalorder %s12_s27, %s952_s28  ;;  %p958_p5 = scmp.lt.s32.totalorder %s952_s28, %s952_s28 }
   0xc   :  { %p959_p6 = por %p958_p5, %p957_p4 }
   0xe   :  { %p960_p7 = pnand %p959_p6, %p953_p3 }
  0x10   :  { %963 = shalt.err (!%p960_p7)  }
  0x11   :  { %s1121_s29 = smov [#allocation4]  }
  0x12   :  { %14 = dma.vmem_to_smem %s12_s27, 16, %s1121_s29, [#allocation2] }
  0x13   :  { %1066 = dma.done.wait [#allocation2], 32 }
  0x14   :  { %1067 = vsyncadd [#allocation2], 4294967264 }
  0x15   :  { %16 = sfence }
  0x16   :  { %17 = vsyncpa [#allocation6], 0 }
  0x17   :  { %19 = vsyncpa [#allocation6 + $0x1], 0 }
  0x18   :  { %20 = vsyncpa [#allocation7], 0 }
  0x19   :  { %22 = vsyncpa [#allocation7 + $0x1], 0  ;;  %s1170_s0 = smov 0   ;;  %s1172_s1 = smov 0  }
  0x1a   :  { %s1174_s30 = smov 0   ;;  %s1176_s5 = smov 0  }
  0x1b   :  { %s1178_s6 = smov 0   ;;  %s1180_s7 = smov 0  }
  0x1c   :  { %s1182_s8 = smov 0   ;;  %s1184_s9 = smov 0  }
  0x1d   :  { %s1186_s10 = smov 0   ;;  %s1188_s11 = smov 0  }
  0x1e   :  { %s1190_s12 = smov 0  }
  0x1f LB: > { %1565 = sst [smem:[#allocation14_spill]] %s1114_s11  ;;  %s692_s13 = sadd.s32 4294967295, %s1118_s12   ;;  %s1118_s12 = sphi %s1190_s12, %s28_s12   ;;  %s1114_s11 = sphi %s1188_s11, %s1579_s11   ;;  %s1110_s10 = sphi %s1186_s10, %s1587_s10   ;;  %s1106_s9 = sphi %s1184_s9, %s1577_s9   ;;  %s1102_s8 = sphi %s1182_s8, %s1586_s8   ;;  %s1098_s7 = sphi %s1180_s7, %s1585_s7   ;;  %s1094_s6 = sphi %s1178_s6, %s1584_s6   ;;  %s1090_s5 = sphi %s1176_s5, %s1583_s5   ;;  %s1086_s30 = sphi %s1174_s30, %s1582_s30   ;;  %s1082_s1 = sphi %s1172_s1, %s1581_s1   ;;  %s1078_s0 = sphi %s1170_s0, %s1580_s0  }
  0x20   : > { %s37_s14 = sadd.s32 1, %s1110_s10  ;;  %s40_s15 = sadd.s32 1, %s1114_s11 }
  0x21   : > { %p38_p8 = scmp.ge.s32.totalorder %s37_s14, 2  ;;  %s78_s16 = sld [smem:[#allocation3 + %s1114_s11]] }
  0x22   : > { %s693_s17 = sadd.s32 4294967294, %s1118_s12   ;;  %p96_p9 = scmp.ne.s32.totalorder %s1098_s7, %s1094_s6 }
  0x23   : > { %s1589_s14 = smov (%p38_p8, %s37_s14), 0  ;;  %s1591_s15 = smov (!%p38_p8, %s40_s15), %s1114_s11 }
  0x24   : > { %1566 = sst [smem:[#allocation15_spill]] %s1589_s14  ;;  %p97_p10 = scmp.eq.s32.totalorder %s1118_s12, 0 }
  0x25   : > { %p102_p11 = scmp.ne.s32.totalorder %s1094_s6, %s1090_s5  ;;  %p42_p12 = scmp.ge.s32.totalorder %s1591_s15, 2 }
  0x26   : > { %p103_p13 = scmp.eq.s32.totalorder %s692_s13, 0  ;;  %p1236_p0 = por %p97_p10, %p96_p9 }
  0x27   : > { %s79_s18 = sadd.s32 %s1110_s10, %s78_s16  ;;  %s1593_s15 = smov (%p42_p12, %s1591_s15), 0 }
  0x28   : > { %1568 = sst [smem:[#allocation16_spill]] %s1593_s15  ;;  %p80_p1 = scmp.lt.s32.totalorder %s79_s18, 1 }
  0x29   : > { %p1242_p2 = por %p103_p13, %p102_p11  ;;  %s82_s21 = sld [smem:[#allocation3 + %s1593_s15]] }
  0x2a   : > { %s112_s22 = ssub.s32 %s1114_s11, %s1593_s15  ;;  %s1595_s18 = smov (!%p80_p1, %s79_s18), 1 }
  0x2b   : > { %s1569_s20 = scalar_select %p1242_p2, 1, 0 }
  0x2c   : > { %p113_p3 = scmp.eq.s32.totalorder %s112_s22, 0  ;;  %s115_s23 = sadd.s32 1, %s1086_s30 }
  0x2d   : > { %p125_p4 = scmp.ne.s32.totalorder %s1086_s30, %s1082_s1  ;;  %p126_p5 = scmp.eq.s32.totalorder %s692_s13, 3 }
  0x2e   : > { %s1253_s24 = scalar_select %p113_p3, %s1086_s30, %s115_s23  }
  0x2f   : > { %p1255_p6 = por %p126_p5, %p125_p4  ;;  %p131_p7 = scmp.ne.s32.totalorder %s1082_s1, %s1078_s0 }
  0x30   : > { %s83_s26 = sadd.s32 %s82_s21, %s1589_s14  ;;  %p132_p8 = scmp.eq.s32.totalorder %s693_s17, 3 }
  0x31   : > { %s1570_s25 = scalar_select %p1255_p6, 1, 0 }
  0x32   : > { %p84_p9 = scmp.lt.s32.totalorder %s83_s26, 1  ;;  %p1262_p10 = por %p132_p8, %p131_p7 }
  0x33   : > { %p836_p11 = scmp.lt.s32.totalorder %s1118_s12, 4  ;;  %s89_s5 = sadd.s32 1, %s1098_s7 }
  0x34   : > { %s1571_s27 = scalar_select %p1262_p10, 1, 0 }
  0x35   : > { %s1597_s26 = smov (!%p84_p9, %s83_s26), 1  ;;  %p1269_p12 = pnand %p836_p11, %p1236_p0 }
  0x36   : > { %s86_s29 = ssub.s32 %s1595_s18, %s1597_s26  ;;  %s166_s13 = sand.u32 1, %s1098_s7  }
  0x37   : > { %p87_p13 = scmp.eq.s32.totalorder %s86_s29, 0  ;;  %s696_s23 = sshll.u32 %s166_s13, 6 }
  0x38   : > { %s820_s17 = scalar_select %p1236_p0, [#allocation3], [#allocation9] }
  0x39   : > { %s1276_s16 = scalar_select %p87_p13, %s1098_s7, %s89_s5  }
  0x3a   : > { %s821_s21 = scalar_select %p1236_p0, %s1114_s11, 0 }
  0x3b   : > { %s1599_s17 = smov (!%p836_p11, %s820_s17), [#allocation10]  ;;  %p699_p1 = scmp.ge.s32.totalorder %s1118_s12, 1 }
  0x3c   : > { %s1601_s21 = smov (!%p836_p11, %s821_s21), 0  ;;  %p189_p3 = scmp.lt.s32.totalorder %s1118_s12, 5 }
  0x3d   : > { %s171_s22 = sld [smem:[%s1599_s17 + %s1601_s21]]  ;;  %s170_s26 = scalar_lea.vmem [#allocation5], %s696_s23 }
  0x3e   : > { %p1285_p4 = pnand %p699_p1, %p189_p3  ;;  %s181_s29 = sshll.u32 %s170_s26, 4  ;;  %s1290_s29 = int_to_ptr.vmem [resolvable:$true] %s181_s29 }
  0x3f   : > { %s1297_s21 = scalar_lea.sflag [#allocation6], %s166_s13  ;;  %p966_p7 = pneg %p1269_p12 }
  0x40   : > { %s969_s14 = scalar_lea.hbm %s1557_s3, 2048 }
  0x43   : > { %s172_s18 = sadd.s32 %s1110_s10, %s171_s22 }
  0x44   : > { %p173_p5 = scmp.lt.s32.totalorder %s172_s18, 1 }
  0x46   : > { %s1603_s18 = smov (!%p173_p5, %s172_s18), 1 }
  0x47   : > { %s754_s19 = sshll.u32 %s1603_s18, 10 }
  0x48   : > { %s1295_s17 = scalar_lea.hbm %s1557_s3, %s754_s19 }
  0x49   : > { %s964_s11 = scalar_lea.hbm %s1295_s17, 1024  ;;  %p970_p11 = scmp.lt.u32.totalorder %s1295_s17, %s1557_s3 }
  0x4a   : > { %p965_p0 = scmp.ne.s32.totalorder %s1295_s17, %s964_s11  ;;  %p971_p13 = scmp.lt.u32.totalorder %s969_s14, %s964_s11 }
  0x4b   : > { %p973_p3 = scmp.lt.u32.totalorder %s964_s11, %s1295_s17 }
  0x4c   : > { %p967_p8 = pnand %p966_p7, %p965_p0  ;;  %p972_p1 = por %p971_p13, %p970_p11 }
  0x4e   : > { %p968_p9 = pneg %p967_p8  ;;  %p974_p5 = por %p973_p3, %p972_p1 }
  0x50   : > { %p975_p10 = pnand %p974_p5, %p968_p9 }
  0x52   : > { %978 = shalt.err (!%p975_p10)
}
  0x53   : > { %s979_s13 = scalar_lea.vmem %s1290_s29, 1024  ;;  %s1122_s19 = smov [#allocation5]  }
  0x54   : > { %p980_p0 = scmp.ne.s32.totalorder %s1290_s29, %s979_s13  ;;  %s984_s5 = sshll.u32 %s1122_s19, 4  ;;  %s985_s5 = int_to_ptr.vmem [resolvable:$false] %s984_s5 }
  0x55   : > { %s986_s22 = scalar_lea.vmem %s985_s5, 2048  ;;  %p987_p2 = scmp.lt.s32.totalorder %s1290_s29, %s985_s5 }
  0x56   : > { %p982_p8 = pnand %p980_p0, %p966_p7  ;;  %p988_p11 = scmp.lt.s32.totalorder %s986_s22, %s979_s13 }
  0x58   : > { %p983_p6 = pneg %p982_p8  ;;  %p989_p13 = por %p988_p11, %p987_p2 }
  0x5a   : > { %p990_p1 = pnand %p989_p13, %p983_p6 }
  0x5c   : > { %993 = shalt.err (!%p990_p1)
}
  0x5d   : > { %s1123_s11 = smov 64   ;;  %s1124_s23 = smov 4  }
  0x5e   : > { %831 = dma.hbm_to_vmem [thread:$0]  (!%p1269_p12), %s1295_s17, 1024, %s1290_s29, %s1297_s21, %s1123_s11, %s1123_s11, %s1124_s23  }
  0x5f   : > { %193 = sbr.rel (%p1285_p4) target bundleno = 419 (0x1a3), region = 28  ;;  %s195_s14 = sand.u32 (!%p1285_p4), 1, %s1094_s6  }
  0x60   : > { %s700_s18 = sshll.u32 (!%p1285_p4), %s195_s14, 6  ;;  %s196_s26 = scalar_lea.sflag (!%p1285_p4), [#allocation6], %s195_s14 }
  0x61   : > { %s1328_s13 = scalar_lea.vmem (!%p1285_p4), [#allocation5], %s700_s18  ;;  %p1574_p2 = scmp.ne.s32.totalorder (!%p1285_p4), %s1569_s20, 0 }
  0x66   : > { %1069 = dma.done.wait (%p1574_p2), %s196_s26, 1024  }
  0x67   : > { %1071 = vsyncadd (%p1574_p2), %s196_s26, 4294966272  ;;  %s224_s15 = sand.u32 1, %s1082_s1   ;;  %s227_s28 = sld [smem:[#allocation3 + %s1106_s9]] }
  0x68   : > { %s1337_s29 = sld [smem:[#allocation4 + %s1106_s9]]  ;;  %s701_s17 = sshll.u32 %s224_s15, 7 }
  0x69   : > { %p246_p6 = scmp.eq.s32.totalorder %s1102_s8, 0  ;;  %s1350_s22 = scalar_lea.vmem [#allocation8], %s701_s17 }
  0x6d   : > { %s228_s21 = sadd.s32 %s1102_s8, %s227_s28 }
  0x6e   : > { %p247_p10 = scmp.eq.s32.totalorder %s1337_s29, 0  ;;  %p229_p12 = scmp.lt.s32.totalorder %s228_s21, 1 }
  0x70   : > { %p248_p4 = pnand %p247_p10, %p246_p6  ;;  %s1605_s21 = smov (!%p229_p12, %s228_s21), 1 }
  0x71   : > { %s1607_s21 = smov (!%p229_p12, %s1605_s21), 1  ;;  %v1125_v0 = vmov (!%p248_p4), 0.0  }
  0x72   : > { %s233_s5 = scalar_lea.vmem %s1556_s2, %s1607_s21  ;;  %251 = sbr.rel (%p248_p4) target bundleno = 122 (0x7a), region = 36  ;;  %252 = vst [vmem:[%s1350_s22] sm:$0xff] (!%p248_p4), %v1125_v0  ;;  %253 = vst [vmem:[%s1350_s22 + $0x8] sm:$0xff] (!%p248_p4), %v1125_v0 }
  0x73   : > { %254 = vst [vmem:[%s1350_s22 + $0x10] sm:$0xff] (!%p248_p4), %v1125_v0  ;;  %255 = vst [vmem:[%s1350_s22 + $0x18] sm:$0xff] (!%p248_p4), %v1125_v0 }
  0x74   : > { %256 = vst [vmem:[%s1350_s22 + $0x20] sm:$0xff] (!%p248_p4), %v1125_v0  ;;  %257 = vst [vmem:[%s1350_s22 + $0x28] sm:$0xff] (!%p248_p4), %v1125_v0 }
  0x75   : > { %258 = vst [vmem:[%s1350_s22 + $0x30] sm:$0xff] (!%p248_p4), %v1125_v0  ;;  %259 = vst [vmem:[%s1350_s22 + $0x38] sm:$0xff] (!%p248_p4), %v1125_v0 }
  0x76   : > { %260 = vst [vmem:[%s1350_s22 + $0x40] sm:$0xff] (!%p248_p4), %v1125_v0  ;;  %261 = vst [vmem:[%s1350_s22 + $0x48] sm:$0xff] (!%p248_p4), %v1125_v0 }
  0x77   : > { %262 = vst [vmem:[%s1350_s22 + $0x50] sm:$0xff] (!%p248_p4), %v1125_v0  ;;  %263 = vst [vmem:[%s1350_s22 + $0x58] sm:$0xff] (!%p248_p4), %v1125_v0 }
  0x78   : > { %264 = vst [vmem:[%s1350_s22 + $0x60] sm:$0xff] (!%p248_p4), %v1125_v0  ;;  %265 = vst [vmem:[%s1350_s22 + $0x68] sm:$0xff] (!%p248_p4), %v1125_v0 }
  0x79   : > { %266 = vst [vmem:[%s1350_s22 + $0x70] sm:$0xff] %v1125_v0  ;;  %267 = vst [vmem:[%s1350_s22 + $0x78] sm:$0xff] %v1125_v0 }
  0x7a PF: > { %p705_p7 = scmp.ge.s32.totalorder %s1102_s8, %s1337_s29 }
  0x7b   : > { %v934_v1 = vld [vmem:[%s1328_s13] sm:$0xff] (!%p705_p7)   ;;  %v276_v2 = vlaneseq (!%p705_p7)  ;;  %v935_v3 = vld [vmem:[%s1328_s13 + $0x8] sm:$0xff] (!%p705_p7)   ;;  %s706_s11 = sshll.u32 (!%p705_p7), %s1106_s9, 7  ;;  %v936_v5 = vld [vmem:[%s1328_s13 + $0x10] sm:$0xff] (!%p705_p7)   ;;  %v1126_v17 = vmov (!%p705_p7), 1.0|1.0  }
  0x7c   : > { %271 = sbr.rel (%p705_p7) target bundleno = 393 (0x189), region = 40  ;;  %772 = vmatprep.subr.bf16.mxu0 (!%p705_p7), %v934_v1  ;;  %804 = vmatprep.subr.bf16.mxu1 (!%p705_p7), %v934_v1  ;;  %v274_v6 = vstv (!%p705_p7), %s706_s11  ;;  %v937_v8 = vld [vmem:[%s1328_s13 + $0x18] sm:$0xff] (!%p705_p7)   ;;  %v938_v15 = vld [vmem:[%s1328_s13 + $0x20] sm:$0xff] (!%p705_p7)   ;;  %v939_v16 = vld [vmem:[%s1328_s13 + $0x28] sm:$0xff] (!%p705_p7)   ;;  %p747_p9 = scmp.ne.s32.totalorder (!%p705_p7), %s1102_s8, 0 }
  0x7d   : > { %773 = vmatpush3.bf16.msra.mxu0 (!%p705_p7), %v934_v1  ;;  %812 = vmatpush3.bf16.msra.mxu1 (!%p705_p7), %v934_v1  ;;  %v1373_v4 = vshrl.u32 (!%p705_p7), %v276_v2, 7  ;;  %v272_v9 = vld [vmem:[%s233_s5] sm:$0x1] (!%p705_p7)  ;;  %v940_v18 = vld [vmem:[%s1328_s13 + $0x30] sm:$0xff] (!%p705_p7)  }
  0x7e   : > { %774 = vmatprep.subr.bf16.mxu0 (!%p705_p7), %v935_v3  ;;  %805 = vmatprep.subr.bf16.mxu1 (!%p705_p7), %v935_v3  ;;  %v275_v10 = vsub.s32 (!%p705_p7), %v272_v9, %v274_v6  ;;  %v941_v23 = vld [vmem:[%s1328_s13 + $0x38] sm:$0xff] (!%p705_p7)  }
  0x7f   : > { %v295_v7 = vsub.s32 (!%p705_p7), 0, %v1373_v4  ;;  %v278_v11 = vadd.s32 (!%p705_p7), 8, %v1373_v4  ;;  %v285_v12 = vadd.s32 (!%p705_p7), 64, %v1373_v4  ;;  %v286_v13 = vadd.s32 (!%p705_p7), 72, %v1373_v4 }
  0x80   : > { %v279_v19 = vadd.s32 (!%p705_p7), 16, %v1373_v4  ;;  %v280_v20 = vadd.s32 (!%p705_p7), 24, %v1373_v4  ;;  %v287_v21 = vadd.s32 (!%p705_p7), 80, %v1373_v4  ;;  %v288_v22 = vadd.s32 (!%p705_p7), 88, %v1373_v4 }
  0x81   : > { %775 = vmatpush3.bf16.msra.mxu0 (!%p705_p7), %v935_v3  ;;  %813 = vmatpush3.bf16.msra.mxu1 (!%p705_p7), %v935_v3  ;;  %v1386_v14 = vrot.slane (!%p705_p7), %v275_v10, %v295_v7  ;;  %v281_v24 = vadd.s32 (!%p705_p7), 32, %v1373_v4  ;;  %v282_v25 = vadd.s32 (!%p705_p7), 40, %v1373_v4  ;;  %v289_v26 = vadd.s32 (!%p705_p7), 96, %v1373_v4 }
  0x82   : > { %776 = vmatprep.subr.bf16.mxu0 (!%p705_p7), %v936_v5  ;;  %806 = vmatprep.subr.bf16.mxu1 (!%p705_p7), %v936_v5  ;;  %v290_v27 = vadd.s32 (!%p705_p7), 104, %v1373_v4  ;;  %v283_v28 = vadd.s32 (!%p705_p7), 48, %v1373_v4  ;;  %v284_v29 = vadd.s32 (!%p705_p7), 56, %v1373_v4  ;;  %v291_v30 = vadd.s32 (!%p705_p7), 112, %v1373_v4 }
  0x83   : > { %vm297_vm0 = vcmp.eq.s32.totalorder %v1373_v4, %v1386_v14  ;;  %vm298_vm1 = vcmp.eq.s32.totalorder %v278_v11, %v1386_v14  ;;  %vm305_vm2 = vcmp.eq.s32.totalorder %v285_v12, %v1386_v14  ;;  %vm306_vm3 = vcmp.eq.s32.totalorder %v286_v13, %v1386_v14 }
  0x84   : > { %vm731_vm4 = vmpackc.low %vm298_vm1, %vm297_vm0  ;;  %vm299_vm6 = vcmp.eq.s32.totalorder %v279_v19, %v1386_v14  ;;  %vm300_vm7 = vcmp.eq.s32.totalorder %v280_v20, %v1386_v14  ;;  %vm307_vm8 = vcmp.eq.s32.totalorder %v287_v21, %v1386_v14  ;;  %vm308_vm9 = vcmp.eq.s32.totalorder %v288_v22, %v1386_v14 }
  0x85   : > { %777 = vmatpush3.bf16.msra.mxu0 %v936_v5  ;;  %814 = vmatpush3.bf16.msra.mxu1 %v936_v5  ;;  %vm739_vm5 = vmpackc.low %vm306_vm3, %vm305_vm2  ;;  %vm301_vm10 = vcmp.eq.s32.totalorder %v281_v24, %v1386_v14  ;;  %vm302_vm11 = vcmp.eq.s32.totalorder %v282_v25, %v1386_v14  ;;  %vm309_vm13 = vcmp.eq.s32.totalorder %v289_v26, %v1386_v14  ;;  %v292_v31 = vadd.s32 120, %v1373_v4 }
  0x86   : > { %778 = vmatprep.subr.bf16.mxu0 %v937_v8  ;;  %807 = vmatprep.subr.bf16.mxu1 %v937_v8  ;;  %vm733_vm12 = vmpackc.low %vm300_vm7, %vm299_vm6  ;;  %vm310_vm14 = vcmp.eq.s32.totalorder %v290_v27, %v1386_v14  ;;  %vm303_vm2 = vcmp.eq.s32.totalorder %v283_v28, %v1386_v14  ;;  %vm304_vm3 = vcmp.eq.s32.totalorder %v284_v29, %v1386_v14 }
  0x87   : > { %788 = vmatprep.mubr.msk.bf16.mxu0 %vm731_vm4, %v1126_v17  ;;  %796 = vmatprep.mubr.msk.bf16.mxu1 %vm739_vm5, %v1126_v17  ;;  %vm741_vm15 = vmpackc.low %vm308_vm9, %vm307_vm8  ;;  %vm311_vm4 = vcmp.eq.s32.totalorder %v291_v30, %v1386_v14  ;;  %vm312_vm5 = vcmp.eq.s32.totalorder %v292_v31, %v1386_v14 }
  0x88   : > { %vm735_vm0 = vmpackc.low %vm302_vm11, %vm301_vm10 }
  0x89   : > { %779 = vmatpush3.bf16.msra.mxu0 %v937_v8  ;;  %815 = vmatpush3.bf16.msra.mxu1 %v937_v8  ;;  %vm743_vm1 = vmpackc.low %vm310_vm14, %vm309_vm13 }
  0x8a   : > { %780 = vmatprep.subr.bf16.mxu0 %v938_v15  ;;  %808 = vmatprep.subr.bf16.mxu1 %v938_v15  ;;  %vm737_vm6 = vmpackc.low %vm304_vm3, %vm303_vm2 }
  0x8b   : > { %vm745_vm7 = vmpackc.low %vm312_vm5, %vm311_vm4 }
  0x8d   : > { %781 = vmatpush3.bf16.msra.mxu0 %v938_v15  ;;  %816 = vmatpush3.bf16.msra.mxu1 %v938_v15 }
  0x8e   : > { %782 = vmatprep.subr.bf16.mxu0 %v939_v16  ;;  %809 = vmatprep.subr.bf16.mxu1 %v939_v16 }
  0x91   : > { %783 = vmatpush3.bf16.msra.mxu0 %v939_v16  ;;  %817 = vmatpush3.bf16.msra.mxu1 %v939_v16 }
  0x92   : > { %784 = vmatprep.subr.bf16.mxu0 %v940_v18  ;;  %810 = vmatprep.subr.bf16.mxu1 %v940_v18 }
  0x95   : > { %785 = vmatpush3.bf16.msra.mxu0 %v940_v18  ;;  %818 = vmatpush3.bf16.msra.mxu1 %v940_v18 }
  0x96   : > { %786 = vmatprep.subr.bf16.mxu0 %v941_v23  ;;  %811 = vmatprep.subr.bf16.mxu1 %v941_v23 }
  0x99   : > { %787 = vmatpush3.bf16.msra.mxu0 %v941_v23  ;;  %819 = vmatpush3.bf16.msra.mxu1 %v941_v23 }
  0x9c   : > { %789 = vmatmul.mubr.msk.bf16.vlgmr.msra.gmra.mrb[0].mxu0 %vm733_vm12, %v1126_v17  ;;  %797 = vmatmul.mubr.msk.bf16.vlgmr.msra.gmra.mrb[0].mxu1 %vm741_vm15, %v1126_v17 }
  0x9d   : > { %792 = vmatprep.mubr.msk.bf16.mxu0 %vm735_vm0, %v1126_v17  ;;  %800 = vmatprep.mubr.msk.bf16.mxu1 %vm743_vm1, %v1126_v17 }
  0xa4   : > { %793 = vmatmul.mubr.msk.bf16.gmra.mrb[4].mxu0 %vm737_vm6, %v1126_v17  ;;  %801 = vmatmul.mubr.msk.bf16.gmra.mrb[4].mxu1 %vm745_vm7, %v1126_v17 }
 0x16f   : > { %v790_v32 = vpop.f32.mrb[0].mxu0  ;;  %v1421_v33 = vpop.f32.mrb[0].mxu1 }
 0x170   : > { %v451_v34 = vpop.f32.mrb[1].mxu0  ;;  %v483_v35 = vpop.f32.mrb[1].mxu1  ;;  %519 = vst [vmem:[%s1350_s22 + $0x10] sm:$0xff] (!%p747_p9), %v790_v32  ;;  %527 = vst [vmem:[%s1350_s22 + $0x50] sm:$0xff] (!%p747_p9), %v1421_v33 }
 0x171   : > { %v791_v36 = vpop.f32.mrb[2].mxu0  ;;  %v799_v37 = vpop.f32.mrb[2].mxu1  ;;  %517 = vst [vmem:[%s1350_s22] sm:$0xff] (!%p747_p9), %v451_v34  ;;  %525 = vst [vmem:[%s1350_s22 + $0x40] sm:$0xff] (!%p747_p9), %v483_v35 }
 0x172   : > { %v454_v38 = vpop.f32.mrb[3].mxu0  ;;  %v486_v39 = vpop.f32.mrb[3].mxu1  ;;  %520 = vst [vmem:[%s1350_s22 + $0x18] sm:$0xff] (!%p747_p9), %v791_v36  ;;  %528 = vst [vmem:[%s1350_s22 + $0x58] sm:$0xff] (!%p747_p9), %v799_v37 }
 0x173   : > { %518 = vst [vmem:[%s1350_s22 + $0x8] sm:$0xff] (!%p747_p9), %v454_v38  ;;  %526 = vst [vmem:[%s1350_s22 + $0x48] sm:$0xff] (!%p747_p9), %v486_v39 }
 0x174   : > { %516 = sbr.rel (%p747_p9) target bundleno = 380 (0x17c), region = 44 }
 0x177   : > { %v794_v40 = vpop.f32.mrb[4].mxu0  ;;  %v1423_v41 = vpop.f32.mrb[4].mxu1 }
 0x178   : > { %v467_v42 = vpop.f32.mrb[5].mxu0  ;;  %v499_v43 = vpop.f32.mrb[5].mxu1  ;;  %523 = vst [vmem:[%s1350_s22 + $0x30] sm:$0xff] (!%p747_p9), %v794_v40  ;;  %531 = vst [vmem:[%s1350_s22 + $0x70] sm:$0xff] (!%p747_p9), %v1423_v41 }
 0x179   : > { %v795_v44 = vpop.f32.mrb[6].mxu0  ;;  %v1425_v45 = vpop.f32.mrb[6].mxu1  ;;  %521 = vst [vmem:[%s1350_s22 + $0x20] sm:$0xff] (!%p747_p9), %v467_v42  ;;  %529 = vst [vmem:[%s1350_s22 + $0x60] sm:$0xff] (!%p747_p9), %v499_v43 }
 0x17a   : > { %v470_v46 = vpop.f32.mrb[7].mxu0  ;;  %v502_v47 = vpop.f32.mrb[7].mxu1  ;;  %524 = vst [vmem:[%s1350_s22 + $0x38] sm:$0xff] (!%p747_p9), %v795_v44  ;;  %532 = vst [vmem:[%s1350_s22 + $0x78] sm:$0xff] (!%p747_p9), %v1425_v45 }
 0x17b   : > { %522 = vst [vmem:[%s1350_s22 + $0x28] sm:$0xff] %v470_v46  ;;  %530 = vst [vmem:[%s1350_s22 + $0x68] sm:$0xff] %v502_v47 }
 0x17c PF: > { %p748_p3 = scmp.le.s32.totalorder %s1102_s8, 0 }
 0x17d   : > { %v537_v48 = vld [vmem:[%s1350_s22] sm:$0xff] (!%p748_p3)  ;;  %v538_v49 = vld [vmem:[%s1350_s22 + $0x8] sm:$0xff] (!%p748_p3)  ;;  %v539_v50 = vld [vmem:[%s1350_s22 + $0x10] sm:$0xff] (!%p748_p3) }
 0x17e   : > { %536 = sbr.rel (%p748_p3) target bundleno = 393 (0x189), region = 48  ;;  %v553_v51 = vadd.f32 (!%p748_p3), %v537_v48, %v451_v34  ;;  %v554_v52 = vadd.f32 (!%p748_p3), %v538_v49, %v454_v38  ;;  %v555_v53 = vadd.f32 (!%p748_p3), %v790_v32, %v539_v50  ;;  %v540_v54 = vld [vmem:[%s1350_s22 + $0x18] sm:$0xff] (!%p748_p3)  ;;  %v545_v62 = vld [vmem:[%s1350_s22 + $0x40] sm:$0xff] (!%p748_p3)  ;;  %v546_v2 = vld [vmem:[%s1350_s22 + $0x48] sm:$0xff] (!%p748_p3) }
 0x17f   : > { %v556_v57 = vadd.f32 (!%p748_p3), %v791_v36, %v540_v54  ;;  %v561_v1 = vadd.f32 (!%p748_p3), %v545_v62, %v483_v35  ;;  %v547_v3 = vld [vmem:[%s1350_s22 + $0x50] sm:$0xff] (!%p748_p3)  ;;  %v548_v4 = vld [vmem:[%s1350_s22 + $0x58] sm:$0xff] (!%p748_p3)  ;;  %v562_v5 = vadd.f32 (!%p748_p3), %v546_v2, %v486_v39 }
 0x180   : > { %v543_v60 = vld [vmem:[%s1350_s22 + $0x30] sm:$0xff] (!%p748_p3)  ;;  %569 = vst [vmem:[%s1350_s22] sm:$0xff] (!%p748_p3), %v553_v51  ;;  %570 = vst [vmem:[%s1350_s22 + $0x8] sm:$0xff] (!%p748_p3), %v554_v52  ;;  %v563_v6 = vadd.f32 (!%p748_p3), %v1421_v33, %v547_v3  ;;  %v564_v7 = vadd.f32 (!%p748_p3), %v799_v37, %v548_v4 }
 0x181   : > { %v541_v55 = vld [vmem:[%s1350_s22 + $0x20] sm:$0xff] (!%p748_p3)  ;;  %571 = vst [vmem:[%s1350_s22 + $0x10] sm:$0xff] (!%p748_p3), %v555_v53  ;;  %v559_v63 = vadd.f32 (!%p748_p3), %v794_v40, %v543_v60  ;;  %572 = vst [vmem:[%s1350_s22 + $0x18] sm:$0xff] (!%p748_p3), %v556_v57  ;;  %v551_v10 = vld [vmem:[%s1350_s22 + $0x70] sm:$0xff] (!%p748_p3) }
 0x182   : > { %v542_v56 = vld [vmem:[%s1350_s22 + $0x28] sm:$0xff] (!%p748_p3)  ;;  %v557_v58 = vadd.f32 (!%p748_p3), %v541_v55, %v467_v42  ;;  %v544_v61 = vld [vmem:[%s1350_s22 + $0x38] sm:$0xff] (!%p748_p3)  ;;  %v549_v8 = vld [vmem:[%s1350_s22 + $0x60] sm:$0xff] (!%p748_p3)  ;;  %577 = vst [vmem:[%s1350_s22 + $0x40] sm:$0xff] (!%p748_p3), %v561_v1  ;;  %v567_v13 = vadd.f32 (!%p748_p3), %v1423_v41, %v551_v10 }
 0x183   : > { %v558_v59 = vadd.f32 (!%p748_p3), %v542_v56, %v470_v46  ;;  %v560_v0 = vadd.f32 (!%p748_p3), %v795_v44, %v544_v61  ;;  %v550_v9 = vld [vmem:[%s1350_s22 + $0x68] sm:$0xff] (!%p748_p3)  ;;  %575 = vst [vmem:[%s1350_s22 + $0x30] sm:$0xff] (!%p748_p3), %v559_v63  ;;  %v565_v11 = vadd.f32 (!%p748_p3), %v549_v8, %v499_v43  ;;  %v552_v14 = vld [vmem:[%s1350_s22 + $0x78] sm:$0xff] (!%p748_p3)  ;;  %578 = vst [vmem:[%s1350_s22 + $0x48] sm:$0xff] (!%p748_p3), %v562_v5 }
 0x184   : > { %573 = vst [vmem:[%s1350_s22 + $0x20] sm:$0xff] (!%p748_p3), %v557_v58  ;;  %v566_v12 = vadd.f32 (!%p748_p3), %v550_v9, %v502_v47  ;;  %579 = vst [vmem:[%s1350_s22 + $0x50] sm:$0xff] (!%p748_p3), %v563_v6  ;;  %v568_v15 = vadd.f32 (!%p748_p3), %v1425_v45, %v552_v14 }
 0x185   : > { %574 = vst [vmem:[%s1350_s22 + $0x28] sm:$0xff] %v558_v59  ;;  %576 = vst [vmem:[%s1350_s22 + $0x38] sm:$0xff] %v560_v0 }
 0x186   : > { %580 = vst [vmem:[%s1350_s22 + $0x58] sm:$0xff] %v564_v7  ;;  %581 = vst [vmem:[%s1350_s22 + $0x60] sm:$0xff] %v565_v11 }
 0x187   : > { %582 = vst [vmem:[%s1350_s22 + $0x68] sm:$0xff] %v566_v12  ;;  %583 = vst [vmem:[%s1350_s22 + $0x70] sm:$0xff] %v567_v13 }
 0x188   : > { %584 = vst [vmem:[%s1350_s22 + $0x78] sm:$0xff] %v568_v15 }
 0x189 PF: > { %s755_s8 = sshll.u32 %s1106_s9, 11  ;;  %s599_s28 = sshll.u32 %s1350_s22, 4  ;;  %s1490_s28 = int_to_ptr.vmem [resolvable:$true] %s599_s28 }
 0x18a   : > { %s1487_s13 = scalar_lea.hbm %s1558_s4, %s755_s8  ;;  %s1494_s29 = scalar_lea.sflag [#allocation7], %s224_s15 }
 0x18b   : > { %s994_s17 = scalar_lea.vmem %s1490_s28, 2048  ;;  %p1575_p0 = scmp.ne.s32.totalorder %s1570_s25, 0 }
 0x18c   : > { %p995_p5 = scmp.ne.s32.totalorder %s1490_s28, %s994_s17  ;;  %s1127_s9 = smov [#allocation8]  }
 0x18d   : > { %s998_s21 = sshll.u32 %s1127_s9, 4  ;;  %s999_s21 = int_to_ptr.vmem [resolvable:$false] %s998_s21 }
 0x18e   : > { %p996_p8 = pnand %p995_p5, %p1575_p0  ;;  %s1000_s20 = scalar_lea.vmem %s999_s21, 4096 }
 0x18f   : > { %p1001_p13 = scmp.lt.s32.totalorder %s1490_s28, %s999_s21  ;;  %p1002_p1 = scmp.lt.s32.totalorder %s1000_s20, %s994_s17 }
 0x190   : > { %p997_p11 = pneg %p996_p8 }
 0x191   : > { %p1003_p2 = por %p1002_p1, %p1001_p13 }
 0x193   : > { %p1004_p6 = pnand %p1003_p2, %p997_p11 }
 0x195   : > { %1007 = shalt.err (!%p1004_p6)
}
 0x196   : > { %s1008_s15 = scalar_lea.hbm %s1487_s13, 2048  ;;  %s1012_s22 = scalar_lea.hbm %s1558_s4, 4096 }
 0x197   : > { %p1009_p10 = scmp.ne.s32.totalorder %s1487_s13, %s1008_s15  ;;  %p1013_p7 = scmp.lt.u32.totalorder %s1487_s13, %s1558_s4 }
 0x198   : > { %p1014_p9 = scmp.lt.u32.totalorder %s1012_s22, %s1008_s15  ;;  %p1016_p5 = scmp.lt.u32.totalorder %s1008_s15, %s1487_s13 }
 0x199   : > { %p1010_p12 = pnand %p1009_p10, %p1575_p0 }
 0x19a   : > { %p1015_p3 = por %p1014_p9, %p1013_p7 }
 0x19b   : > { %p1011_p4 = pneg %p1010_p12 }
 0x19c   : > { %p1017_p8 = por %p1016_p5, %p1015_p3 }
 0x19e   : > { %p1018_p11 = pnand %p1017_p8, %p1011_p4 }
 0x1a0   : > { %1021 = shalt.err (!%p1018_p11)
}
 0x1a1   : > { %s1128_s14 = smov 128   ;;  %s1129_s8 = smov 8  }
 0x1a2   : > { %824 = dma.vmem_to_hbm [thread:$0]  (%p1575_p0), %s1490_s28, 2048, %s1487_s13, %s1494_s29, %s1128_s14, %s1128_s14, %s1129_s8  }
 0x1a3 PF: > { %p837_p13 = scmp.ge.s32.totalorder %s1118_s12, 2  ;;  %s614_s18 = sand.u32 1, %s1078_s0  }
 0x1a4   : > { %p1576_p1 = scmp.ne.s32.totalorder %s1571_s27, 0  ;;  %s615_s26 = scalar_lea.sflag [#allocation7], %s614_s18 }
 0x1a6   : > { %p833_p2 = pnand %p837_p13, %p1576_p1 }
 0x1a8   : > { %1073 = dma.done.wait (!%p833_p2), %s615_s26, 2048  }
 0x1a9   : > { %1075 = vsyncadd (!%p833_p2), %s615_s26, 4294965248  ;;  %s28_s12 = sadd.s32 1, %s1118_s12   ;;  %s1577_s9 = sld [smem:[#allocation14_spill]] }
 0x1aa   : > { %p25_p6 = scmp.ge.s32.totalorder %s28_s12, 6   ;;  %s1578_s25 = sld [smem:[#allocation15_spill]] }
 0x1ab   : > { %s1579_s11 = sld [smem:[#allocation16_spill]]  ;;  %s1580_s0 = smov %s1082_s1 }
 0x1ac   : > { %s1581_s1 = smov %s1086_s30  ;;  %s1582_s30 = smov %s1253_s24 }
 0x1ad   : > { %s1583_s5 = smov %s1094_s6  ;;  %s1584_s6 = smov %s1098_s7 }
 0x1ae   : > { %s1585_s7 = smov %s1276_s16  ;;  %s1586_s8 = smov %s1110_s10 }
 0x1af   :  { %27 = sbr.rel (!%p25_p6) target bundleno = 31 (0x1f), region = 92 }
 0x1b0   : > { %s1587_s10 = smov %s1578_s25 }
 0x1b6   :  { %620 = vsyncpa [#allocation6], 1 }
 0x1b7   :  { %622 = vsyncpa [#allocation6 + $0x1], 1 }
 0x1b8   :  { %623 = vsyncpa [#allocation7], 1 }
 0x1b9   :  { %625 = vsyncpa [#allocation7 + $0x1], 1 }

</bundles_post_ra>
